<compile_context>
chip_gen: v6e
topology: v6e:2x2x1
jax: 0.10.0
libtpu: 0.0.40
codegen_flags: <defaults>
</compile_context>

<pallas_src>
import functools

import jax
import jax.numpy as jnp
from jax.experimental import pallas as pl
from jax.experimental.pallas import tpu as pltpu

FOCAL_ALPHA = 0.25
FOCAL_GAMMA = 2.0  # == 2.0 -> implemented as an explicit square (q * q)


def _round_up(x, m):
    return (x + m - 1) // m * m


def _device_kind():
    try:
        return jax.devices()[0].device_kind.lower().replace(" ", "")
    except Exception:
        return ""


def _hybrid_loss_kernel(cls_ref, tgt_ref, bp_ref, bt_ref, out_ref,
                        *, n_true, alpha, beta, gamma, chunk):
    core = pl.program_id(0)            # "parallel" axis (one partial per core)
    step = pl.program_id(1)            # "arbitrary" reduction axis over N-tiles
    tiles_per_core = pl.num_programs(1)

    tn, c = cls_ref.shape              # (TILE_N, C), static
    assert tn % chunk == 0
    n_chunks = tn // chunk
    row_base = (core * tiles_per_core + step) * tn

    @pl.when(step == 0)
    def _init():
        out_ref[0, 0] = 0.0

    # ---------------- Focal loss (fused CE, chunked to bound temporaries) ----
    # Each chunk materializes only (chunk, C) f32 temporaries, so the DMA tile
    # (tn rows) can be much larger than the compute chunk.  Per-chunk work is
    # large (chunk*C elementwise + transcendentals) so the loop overhead is
    # negligible, while the real loop keeps live VMEM temporaries bounded.
    def _focal_chunk(j, acc):
        start = pl.multiple_of(j * chunk, chunk)
        logits = cls_ref[pl.ds(start, chunk), :].astype(jnp.float32)  # (chunk, C)
        tgt = tgt_ref[pl.ds(start, chunk), :]                          # (chunk, 1)
        m = jnp.max(logits, axis=-1, keepdims=True)
        z = logits - m
        lse = jnp.log(jnp.sum(jnp.exp(z), axis=-1, keepdims=True))
        col = jax.lax.broadcasted_iota(jnp.int32, (chunk, c), 1)
        z_tgt = jnp.sum(jnp.where(col == tgt, z, 0.0), axis=-1, keepdims=True)
        ce = lse - z_tgt                                               # per-row CE
        pt = jnp.exp(-ce)
        q = 1.0 - pt
        if FOCAL_GAMMA == 2.0:
            w = q * q                 # explicit square: no EUP pow / NaN hazard
        else:                         # guard: stays correct if the constant changes
            w = q ** FOCAL_GAMMA
        row = (row_base + start
               + jax.lax.broadcasted_iota(jnp.int32, (chunk, 1), 0))
        # Select-mask (not multiply-by-mask): garbage rows of a ragged /
        # clamped logits block may hold NaN/Inf; select keeps them out.
        part = jnp.sum(jnp.where(row < n_true, w * ce, 0.0))
        return acc + part

    focal_sum = jax.lax.fori_loop(0, n_chunks, _focal_chunk,
                                  jnp.zeros((1, 1), jnp.float32))[0, 0]

    # ---------------- L1 + CIoU on boxes (lane-dense (TB, 128) coords) -------
    bp = bp_ref[...].astype(jnp.float32)                 # (TB, 4, 128)
    bt = bt_ref[...].astype(jnp.float32)
    px1 = bp[:, 0, :]; py1 = bp[:, 1, :]; px2 = bp[:, 2, :]; py2 = bp[:, 3, :]
    tx1 = bt[:, 0, :]; ty1 = bt[:, 1, :]; tx2 = bt[:, 2, :]; ty2 = bt[:, 3, :]

    l1_box = (jnp.abs(px1 - tx1) + jnp.abs(py1 - ty1) +
              jnp.abs(px2 - tx2) + jnp.abs(py2 - ty2))

    pred_area = (px2 - px1) * (py2 - py1)
    tgt_area = (tx2 - tx1) * (ty2 - ty1)
    inter_w = jnp.maximum(jnp.minimum(px2, tx2) - jnp.maximum(px1, tx1), 0.0)
    inter_h = jnp.maximum(jnp.minimum(py2, ty2) - jnp.maximum(py1, ty1), 0.0)
    inter_area = inter_w * inter_h
    union_area = pred_area + tgt_area - inter_area
    iou = inter_area / (union_area + 1e-6)
    cdx = px1 + px2 - tx1 - tx2
    cdy = py1 + py2 - ty1 - ty2
    center_d = cdx * cdx + cdy * cdy
    ddx = jnp.maximum(px2, tx2) - jnp.minimum(px1, tx1)
    ddy = jnp.maximum(py2, ty2) - jnp.minimum(py1, ty1)
    diag_d = ddx * ddx + ddy * ddy
    ciou = iou - center_d / (diag_d + 1e-6)

    tb = bp.shape[0]
    box_row = (row_base
               + jax.lax.broadcasted_iota(jnp.int32, (tb, 128), 0) * 128
               + jax.lax.broadcasted_iota(jnp.int32, (tb, 128), 1))
    # Fold beta/4 and gamma so L1 + CIoU share a single cross-lane reduction.
    combined = (beta * 0.25) * l1_box + gamma * (1.0 - ciou)
    box_sum = jnp.sum(jnp.where(box_row < n_true, combined, 0.0))

    inv_n = 1.0 / n_true
    out_ref[0, 0] += ((alpha * FOCAL_ALPHA) * focal_sum + box_sum) * inv_n


def hybrid_loss(class_preds, class_targets, bbox_preds, bbox_targets,
                alpha=1.0, beta=1.0, gamma=1.0, *,
                tile_n=None, num_cores=None, compute_chunk=512):
    n, c = class_preds.shape
    assert bbox_preds.shape == (n, 4) and bbox_targets.shape == (n, 4)

    kind = _device_kind()
    is_v7 = ("v7" in kind) or ("tpu7" in kind)

    # Generation-aware core split: the leading "parallel" grid axis shards the
    # N-tiles across the 2 TensorCores on v7x; on v5e/v6e (single TC) it would
    # only add padding/step overhead, so default to 1.
    if num_cores is None:
        num_cores = 2 if is_v7 else 1
    num_cores = int(max(1, min(num_cores, pl.cdiv(n, 128))))

    # Per-TensorCore VMEM budget: v7x has 64 MiB physical (stay <= ~48 MiB),
    # v5e/v6e have 128 MiB (use up to ~96 MiB).
    phys_vmem = (64 << 20) if is_v7 else (128 << 20)
    try:  # never *increase* the heuristic guess, only tighten it
        info_vmem = int(pltpu.get_tpu_info().vmem_capacity_bytes)
        if info_vmem > 0:
            phys_vmem = min(phys_vmem, info_vmem)
    except Exception:
        pass
    vmem_budget = (phys_vmem * 3) // 4

    cls_itemsize = class_preds.dtype.itemsize
    box_itemsize = bbox_preds.dtype.itemsize
    c_pad = _round_up(c, 128)

    # Lane-padded per-row VMEM bytes of the double-buffered input streams.
    # TODO(synk): casting targets to int16 (2x sublane packing) would shrink
    # the 2*512 B/row term; kept int32 here for maximal lowering safety.
    row_bytes = (2 * c_pad * cls_itemsize      # logits tile (C padded to 128 lanes)
                 + 2 * 128 * 4                 # (tn,1) int32 target col, lane-padded
                 + 2 * 2 * 4 * box_itemsize    # two box arrays
                 + 128)                        # per-row box-math temporaries
    chunk0 = max(128, _round_up(min(int(compute_chunk), 1024), 128))
    fixed_bytes = chunk0 * c_pad * 4 * 8 + (4 << 20)   # focal temps + headroom
    max_rows = max(128, (vmem_budget - fixed_bytes) // row_bytes)

    # Tile cap: big tiles amortize the ~0.35us/step overhead; v7x is capped
    # lower because of its smaller VMEM.
    tile_cap = int(tile_n) if tile_n is not None else (8192 if is_v7 else 16384)
    needed = _round_up(pl.cdiv(n, num_cores), 128)
    tn = int(min(tile_cap, max_rows, needed))
    if tn >= chunk0:
        tn = (tn // chunk0) * chunk0          # multiple of the compute chunk
        chunk = chunk0
    else:
        tn = _round_up(max(tn, 128), 128)
        chunk = tn

    tiles_per_core = int(pl.cdiv(n, num_cores * tn))
    n_pad = num_cores * tiles_per_core * tn
    tb = tn // 128

    # ---- Input prep -----------------------------------------------------
    # Logits stay UNPADDED: ragged final blocks + the in-kernel row mask make
    # a full (N, C) pad copy (the dominant HBM cost) unnecessary.
    cls = class_preds
    tgt = class_targets.astype(jnp.int32).reshape(n, 1)
    bp = bbox_preds
    bt = bbox_targets
    pad = n_pad - n
    if pad:
        tgt = jnp.pad(tgt, ((0, pad), (0, 0)))
        bp = jnp.pad(bp, ((0, pad), (0, 0)))
        bt = jnp.pad(bt, ((0, pad), (0, 0)))
    # Lane-dense box layout: row r, coord k -> (r // 128, k, r % 128).
    # TODO(synk): if the data pipeline can emit boxes in this layout directly,
    # this tiny wrapper reshape/transpose disappears entirely.
    bp = bp.reshape(n_pad // 128, 128, 4).transpose(0, 2, 1)
    bt = bt.reshape(n_pad // 128, 128, 4).transpose(0, 2, 1)

    # ---- Index maps -------------------------------------------------------
    max_cls_block = max(pl.cdiv(n, tn) - 1, 0)

    def cls_index(ci, i):
        # Clamp so grid steps that run past the unpadded logits re-read the
        # last valid block; those rows are masked out by `row < n_true`.
        return (jnp.minimum(ci * tiles_per_core + i, max_cls_block), 0)

    def row_index(ci, i):
        return (ci * tiles_per_core + i, 0)

    def box_index(ci, i):
        return (ci * tiles_per_core + i, 0, 0)

    # Deeper buffering only helps when tiles are small and there are many
    # steps; never triggered for tiny N so it adds no risk there.
    use_deep_buffer = (tn <= 1024) and (tiles_per_core >= 4)
    cls_kwargs = {"pipeline_mode": pl.Buffered(3)} if use_deep_buffer else {}
    cls_spec = pl.BlockSpec((tn, c), cls_index, **cls_kwargs)

    # ---- VMEM limit / cost estimate (lane-padded accounting) --------------
    n_cls_bufs = 3 if use_deep_buffer else 2
    est_vmem = (n_cls_bufs * tn * c_pad * cls_itemsize
                + 2 * tn * 128 * 4                      # int32 target column
                + 2 * 2 * tb * 4 * 128 * box_itemsize   # box tiles
                + chunk * c_pad * 4 * 8                 # focal chunk temporaries
                + tb * 128 * 4 * 24                     # box temporaries
                + (2 << 20))
    vmem_limit = int(min(max(est_vmem, 16 << 20), vmem_budget))

    cost = pl.CostEstimate(
        flops=int(n_pad * (6 * c + 80)),
        transcendentals=int(n_pad * (c + 3)),
        bytes_accessed=int(n * c * cls_itemsize + n_pad * 4
                           + 2 * n_pad * 4 * box_itemsize + num_cores * 4),
    )

    kernel = functools.partial(_hybrid_loss_kernel, n_true=n,
                               alpha=float(alpha), beta=float(beta),
                               gamma=float(gamma), chunk=chunk)

    # TODO(synk): for C << 128 on v7x, pack 128//C rows per vreg row with
    # segmented max/lse reductions to recover the wasted lanes (VALU-bound
    # regime there); not done here to keep lowering simple.
    partials = pl.pallas_call(
        kernel,
        out_shape=jax.ShapeDtypeStruct((num_cores, 1), jnp.float32),
        grid=(num_cores, tiles_per_core),
        in_specs=[
            cls_spec,
            pl.BlockSpec((tn, 1), row_index),
            pl.BlockSpec((tb, 4, 128), box_index),
            pl.BlockSpec((tb, 4, 128), box_index),
        ],
        out_specs=pl.BlockSpec((1, 1), lambda ci, i: (ci, 0),
                               memory_space=pltpu.MemorySpace.SMEM),
        compiler_params=pltpu.CompilerParams(
            dimension_semantics=("parallel", "arbitrary"),
            vmem_limit_bytes=vmem_limit),
        cost_estimate=cost,
    )(cls, tgt, bp, bt)

    return jnp.sum(partials)


def _hybrid_loss_ref(class_preds, class_targets, bbox_preds, bbox_targets,
                     alpha=1.0, beta=1.0, gamma=1.0):
    """Pure-JAX reference matching the PyTorch semantics."""
    logp = jax.nn.log_softmax(class_preds.astype(jnp.float32), axis=-1)
    ce = -jnp.take_along_axis(logp, class_targets[:, None].astype(jnp.int32),
                              axis=-1)[:, 0]
    pt = jnp.exp(-ce)
    focal = (FOCAL_ALPHA * (1.0 - pt) ** FOCAL_GAMMA * ce).mean()

    bp = bbox_preds.astype(jnp.float32)
    bt = bbox_targets.astype(jnp.float32)
    l1 = jnp.abs(bp - bt).mean()

    pw = bp[:, 2] - bp[:, 0]; ph = bp[:, 3] - bp[:, 1]
    tw = bt[:, 2] - bt[:, 0]; th = bt[:, 3] - bt[:, 1]
    pa = pw * ph; ta = tw * th
    iw = jnp.clip(jnp.minimum(bp[:, 2], bt[:, 2]) -
                  jnp.maximum(bp[:, 0], bt[:, 0]), 0.0)
    ih = jnp.clip(jnp.minimum(bp[:, 3], bt[:, 3]) -
                  jnp.maximum(bp[:, 1], bt[:, 1]), 0.0)
    ia = iw * ih
    iou = ia / (pa + ta - ia + 1e-6)
    cd = (bp[:, 0] + bp[:, 2] - bt[:, 0] - bt[:, 2]) ** 2 + \
         (bp[:, 1] + bp[:, 3] - bt[:, 1] - bt[:, 3]) ** 2
    dd = (jnp.maximum(bp[:, 2], bt[:, 2]) - jnp.minimum(bp[:, 0], bt[:, 0])) ** 2 + \
         (jnp.maximum(bp[:, 3], bt[:, 3]) - jnp.minimum(bp[:, 1], bt[:, 1])) ** 2
    ciou = (1.0 - (iou - cd / (dd + 1e-6))).mean()
    return alpha * focal + beta * l1 + gamma * ciou


def _make_inputs(key, n, c):
    k1, k2, k3, k4, k5 = jax.random.split(key, 5)
    class_preds = jax.random.normal(k1, (n, c), dtype=jnp.float32)
    class_targets = jax.random.randint(k2, (n,), 0, c, dtype=jnp.int32)
    xy1 = jax.random.uniform(k3, (n, 2), dtype=jnp.float32) * 10.0
    wh = jax.random.uniform(k4, (n, 2), dtype=jnp.float32) * 5.0 + 0.1
    bbox_targets = jnp.concatenate([xy1, xy1 + wh], axis=-1)          # (n, 4)
    noise = jax.random.normal(k5, (n, 4), dtype=jnp.float32) * 0.5
    bbox_preds = bbox_targets + noise                                  # (n, 4)
    return class_preds, class_targets, bbox_preds, bbox_targets


if __name__ == "__main__":
    key = jax.random.PRNGKey(0)
    key1, key2 = jax.random.split(key, 2)

    # Small case: N=8 detections, C=32 classes.
    cp, ct, bp_, bt_ = _make_inputs(key1, 8, 32)
    loss = jax.block_until_ready(hybrid_loss(cp, ct, bp_, bt_))
    ref = _hybrid_loss_ref(cp, ct, bp_, bt_)
    assert jnp.allclose(loss, ref, rtol=1e-5, atol=1e-5), (loss, ref)

    # Non-tile-aligned case exercising the unpadded (ragged/clamped) logits
    # path, multiple grid steps and the per-step accumulator.
    cp2, ct2, bp2, bt2 = _make_inputs(key2, 300, 32)
    loss2 = jax.block_until_ready(
        hybrid_loss(cp2, ct2, bp2, bt2, alpha=0.5, beta=2.0, gamma=1.5,
                    tile_n=128))
    ref2 = _hybrid_loss_ref(cp2, ct2, bp2, bt2, alpha=0.5, beta=2.0, gamma=1.5)
    assert jnp.allclose(loss2, ref2, rtol=1e-4, atol=1e-5), (loss2, ref2)

    print("KERNEL_OK")
</pallas_src>

<mosaic_0001>
module attributes {stable_mosaic.version = 11 : i64} {
  func.func @_hybrid_loss_kernel(%arg0: i32, %arg1: i32, %arg2: memref<128x32xf32, #tpu.memory_space<vmem>>, %arg3: memref<128x1xi32, #tpu.memory_space<vmem>>, %arg4: memref<1x4x128xf32, #tpu.memory_space<vmem>>, %arg5: memref<1x4x128xf32, #tpu.memory_space<vmem>>, %arg6: memref<1x1xf32, #tpu.memory_space<smem>>) attributes {dimension_semantics = [#tpu.dimension_semantics<parallel>, #tpu.dimension_semantics<arbitrary>], iteration_bounds = array<i64: 1, 1>, scalar_prefetch = 0 : i64, scratch_operands = 0 : i64, tpu.core_type = #tpu.core_type<tc>, window_params = [{transform_indices = @transform_0, window_bounds = array<i64: 128, 32>}, {transform_indices = @transform_1, window_bounds = array<i64: 128, 1>}, {transform_indices = @transform_2, window_bounds = array<i64: 1, 4, 128>}, {transform_indices = @transform_3, window_bounds = array<i64: 1, 4, 128>}, {transform_indices = @transform_4, window_bounds = array<i64: 1, 1>}]} {
    %c1_i32 = arith.constant 1 : i32
    %0 = arith.muli %arg0, %c1_i32 : i32
    %1 = arith.addi %0, %arg1 : i32
    %c128_i32 = arith.constant 128 : i32
    %2 = arith.muli %1, %c128_i32 : i32
    %c0_i32 = arith.constant 0 : i32
    %3 = arith.cmpi eq, %arg1, %c0_i32 : i32
    %4 = arith.extui %3 : i1 to i32
    %c0_i32_0 = arith.constant 0 : i32
    %5 = arith.cmpi ne, %4, %c0_i32_0 : i32
    scf.if %5 {
      %cst_36 = arith.constant 0.000000e+00 : f32
      %c0_37 = arith.constant 0 : index
      %c0_38 = arith.constant 0 : index
      %152 = memref.load %arg6[%c0_37, %c0_38] : memref<1x1xf32, #tpu.memory_space<smem>>
      memref.store %cst_36, %arg6[%c0_37, %c0_38] : memref<1x1xf32, #tpu.memory_space<smem>>
    } else {
    }
    %cst = arith.constant 0.000000e+00 : f32
    %6 = vector.broadcast %cst : f32 to vector<1x1xf32>
    %c0_i32_1 = arith.constant 0 : i32
    %c128_i32_2 = arith.constant 128 : i32
    %7 = arith.muli %c0_i32_1, %c128_i32_2 : i32
    %8 = tpu.assume_multiple %7, 128 : i32
    %9 = arith.index_cast %8 : i32 to index
    %c0 = arith.constant 0 : index
    %10 = vector.load %arg2[%9, %c0] : memref<128x32xf32, #tpu.memory_space<vmem>>, vector<128x32xf32>
    %11 = arith.index_cast %8 : i32 to index
    %c0_3 = arith.constant 0 : index
    %12 = vector.load %arg3[%11, %c0_3] : memref<128x1xi32, #tpu.memory_space<vmem>>, vector<128x1xi32>
    %cst_4 = arith.constant dense<0xFF800000> : vector<128xf32>
    %13 = vector.multi_reduction <maximumf>, %10, %cst_4 [1] : vector<128x32xf32> to vector<128xf32>
    %14 = vector.shape_cast %13 : vector<128xf32> to vector<128x1xf32>
    %15 = vector.broadcast %14 : vector<128x1xf32> to vector<128x32xf32>
    %16 = arith.subf %10, %15 : vector<128x32xf32>
    %17 = math.exp %16 : vector<128x32xf32>
    %cst_5 = arith.constant dense<0.000000e+00> : vector<128xf32>
    %18 = vector.multi_reduction <add>, %17, %cst_5 [1] : vector<128x32xf32> to vector<128xf32>
    %19 = vector.shape_cast %18 : vector<128xf32> to vector<128x1xf32>
    %20 = math.log %19 : vector<128x1xf32>
    %21 = tpu.iota {dimensions = array<i32: 1>} : vector<128x32xi32>
    %22 = vector.broadcast %12 : vector<128x1xi32> to vector<128x32xi32>
    %23 = arith.cmpi eq, %21, %22 : vector<128x32xi32>
    %cst_6 = arith.constant 0.000000e+00 : f32
    %24 = vector.broadcast %cst_6 : f32 to vector<128x32xf32>
    %25 = arith.select %23, %16, %24 : vector<128x32xi1>, vector<128x32xf32>
    %cst_7 = arith.constant dense<0.000000e+00> : vector<128xf32>
    %26 = vector.multi_reduction <add>, %25, %cst_7 [1] : vector<128x32xf32> to vector<128xf32>
    %27 = vector.shape_cast %26 : vector<128xf32> to vector<128x1xf32>
    %28 = arith.subf %20, %27 : vector<128x1xf32>
    %cst_8 = arith.constant 0.000000e+00 : f32
    %29 = vector.broadcast %cst_8 : f32 to vector<128x1xf32>
    %30 = arith.subf %29, %28 : vector<128x1xf32>
    %31 = math.exp %30 : vector<128x1xf32>
    %cst_9 = arith.constant 1.000000e+00 : f32
    %32 = vector.broadcast %cst_9 : f32 to vector<128x1xf32>
    %33 = arith.subf %32, %31 : vector<128x1xf32>
    %34 = arith.mulf %33, %33 : vector<128x1xf32>
    %35 = arith.addi %2, %8 : i32
    %36 = tpu.iota {dimensions = array<i32: 0>} : vector<128x1xi32>
    %37 = vector.broadcast %35 : i32 to vector<128x1xi32>
    %38 = arith.addi %37, %36 : vector<128x1xi32>
    %c8_i32 = arith.constant 8 : i32
    %39 = vector.broadcast %c8_i32 : i32 to vector<128x1xi32>
    %40 = arith.cmpi slt, %38, %39 : vector<128x1xi32>
    %41 = arith.mulf %34, %28 : vector<128x1xf32>
    %cst_10 = arith.constant 0.000000e+00 : f32
    %42 = vector.broadcast %cst_10 : f32 to vector<128x1xf32>
    %43 = arith.select %40, %41, %42 : vector<128x1xi1>, vector<128x1xf32>
    %44 = vector.shape_cast %43 : vector<128x1xf32> to vector<1x128x1xf32>
    %cst_11 = arith.constant dense<0.000000e+00> : vector<1xf32>
    %45 = vector.multi_reduction <add>, %44, %cst_11 [1, 2] : vector<1x128x1xf32> to vector<1xf32>
    %46 = vector.shape_cast %45 : vector<1xf32> to vector<1x1x1xf32>
    %47 = vector.extract %46[0, 0, 0] : f32 from vector<1x1x1xf32>
    %48 = vector.broadcast %47 : f32 to vector<1x1xf32>
    %49 = arith.addf %6, %48 : vector<1x1xf32>
    %c1_i32_12 = arith.constant 1 : i32
    %50 = vector.extract %49[0, 0] : f32 from vector<1x1xf32>
    %c0_13 = arith.constant 0 : index
    %c0_14 = arith.constant 0 : index
    %c0_15 = arith.constant 0 : index
    %51 = vector.load %arg4[%c0_13, %c0_14, %c0_15] : memref<1x4x128xf32, #tpu.memory_space<vmem>>, vector<1x4x128xf32>
    %c0_16 = arith.constant 0 : index
    %c0_17 = arith.constant 0 : index
    %c0_18 = arith.constant 0 : index
    %52 = vector.load %arg5[%c0_16, %c0_17, %c0_18] : memref<1x4x128xf32, #tpu.memory_space<vmem>>, vector<1x4x128xf32>
    %53 = vector.extract_strided_slice %51 {offsets = [0, 0, 0], sizes = [1, 1, 128], strides = [1, 1, 1]} : vector<1x4x128xf32> to vector<1x1x128xf32>
    %54 = vector.shape_cast %53 : vector<1x1x128xf32> to vector<1x128xf32>
    %55 = vector.extract_strided_slice %51 {offsets = [0, 1, 0], sizes = [1, 1, 128], strides = [1, 1, 1]} : vector<1x4x128xf32> to vector<1x1x128xf32>
    %56 = vector.shape_cast %55 : vector<1x1x128xf32> to vector<1x128xf32>
    %57 = vector.extract_strided_slice %51 {offsets = [0, 2, 0], sizes = [1, 1, 128], strides = [1, 1, 1]} : vector<1x4x128xf32> to vector<1x1x128xf32>
    %58 = vector.shape_cast %57 : vector<1x1x128xf32> to vector<1x128xf32>
    %59 = vector.extract_strided_slice %51 {offsets = [0, 3, 0], sizes = [1, 1, 128], strides = [1, 1, 1]} : vector<1x4x128xf32> to vector<1x1x128xf32>
    %60 = vector.shape_cast %59 : vector<1x1x128xf32> to vector<1x128xf32>
    %61 = vector.extract_strided_slice %52 {offsets = [0, 0, 0], sizes = [1, 1, 128], strides = [1, 1, 1]} : vector<1x4x128xf32> to vector<1x1x128xf32>
    %62 = vector.shape_cast %61 : vector<1x1x128xf32> to vector<1x128xf32>
    %63 = vector.extract_strided_slice %52 {offsets = [0, 1, 0], sizes = [1, 1, 128], strides = [1, 1, 1]} : vector<1x4x128xf32> to vector<1x1x128xf32>
    %64 = vector.shape_cast %63 : vector<1x1x128xf32> to vector<1x128xf32>
    %65 = vector.extract_strided_slice %52 {offsets = [0, 2, 0], sizes = [1, 1, 128], strides = [1, 1, 1]} : vector<1x4x128xf32> to vector<1x1x128xf32>
    %66 = vector.shape_cast %65 : vector<1x1x128xf32> to vector<1x128xf32>
    %67 = vector.extract_strided_slice %52 {offsets = [0, 3, 0], sizes = [1, 1, 128], strides = [1, 1, 1]} : vector<1x4x128xf32> to vector<1x1x128xf32>
    %68 = vector.shape_cast %67 : vector<1x1x128xf32> to vector<1x128xf32>
    %69 = arith.subf %54, %62 : vector<1x128xf32>
    %70 = math.absf %69 : vector<1x128xf32>
    %71 = arith.subf %56, %64 : vector<1x128xf32>
    %72 = math.absf %71 : vector<1x128xf32>
    %73 = arith.addf %70, %72 : vector<1x128xf32>
    %74 = arith.subf %58, %66 : vector<1x128xf32>
    %75 = math.absf %74 : vector<1x128xf32>
    %76 = arith.addf %73, %75 : vector<1x128xf32>
    %77 = arith.subf %60, %68 : vector<1x128xf32>
    %78 = math.absf %77 : vector<1x128xf32>
    %79 = arith.addf %76, %78 : vector<1x128xf32>
    %80 = arith.subf %58, %54 : vector<1x128xf32>
    %81 = arith.subf %60, %56 : vector<1x128xf32>
    %82 = arith.mulf %80, %81 : vector<1x128xf32>
    %83 = arith.subf %66, %62 : vector<1x128xf32>
    %84 = arith.subf %68, %64 : vector<1x128xf32>
    %85 = arith.mulf %83, %84 : vector<1x128xf32>
    %86 = arith.minimumf %58, %66 : vector<1x128xf32>
    %87 = arith.maximumf %54, %62 : vector<1x128xf32>
    %88 = arith.subf %86, %87 : vector<1x128xf32>
    %cst_19 = arith.constant 0.000000e+00 : f32
    %89 = vector.broadcast %cst_19 : f32 to vector<1x128xf32>
    %90 = arith.maximumf %88, %89 : vector<1x128xf32>
    %91 = arith.minimumf %60, %68 : vector<1x128xf32>
    %92 = arith.maximumf %56, %64 : vector<1x128xf32>
    %93 = arith.subf %91, %92 : vector<1x128xf32>
    %cst_20 = arith.constant 0.000000e+00 : f32
    %94 = vector.broadcast %cst_20 : f32 to vector<1x128xf32>
    %95 = arith.maximumf %93, %94 : vector<1x128xf32>
    %96 = arith.mulf %90, %95 : vector<1x128xf32>
    %97 = arith.addf %82, %85 : vector<1x128xf32>
    %98 = arith.subf %97, %96 : vector<1x128xf32>
    %cst_21 = arith.constant 9.99999997E-7 : f32
    %99 = vector.broadcast %cst_21 : f32 to vector<1x128xf32>
    %100 = arith.addf %98, %99 : vector<1x128xf32>
    %101 = arith.divf %96, %100 : vector<1x128xf32>
    %102 = arith.addf %54, %58 : vector<1x128xf32>
    %103 = arith.subf %102, %62 : vector<1x128xf32>
    %104 = arith.subf %103, %66 : vector<1x128xf32>
    %105 = arith.addf %56, %60 : vector<1x128xf32>
    %106 = arith.subf %105, %64 : vector<1x128xf32>
    %107 = arith.subf %106, %68 : vector<1x128xf32>
    %108 = arith.mulf %104, %104 : vector<1x128xf32>
    %109 = arith.mulf %107, %107 : vector<1x128xf32>
    %110 = arith.addf %108, %109 : vector<1x128xf32>
    %111 = arith.maximumf %58, %66 : vector<1x128xf32>
    %112 = arith.minimumf %54, %62 : vector<1x128xf32>
    %113 = arith.subf %111, %112 : vector<1x128xf32>
    %114 = arith.maximumf %60, %68 : vector<1x128xf32>
    %115 = arith.minimumf %56, %64 : vector<1x128xf32>
    %116 = arith.subf %114, %115 : vector<1x128xf32>
    %117 = arith.mulf %113, %113 : vector<1x128xf32>
    %118 = arith.mulf %116, %116 : vector<1x128xf32>
    %119 = arith.addf %117, %118 : vector<1x128xf32>
    %cst_22 = arith.constant 9.99999997E-7 : f32
    %120 = vector.broadcast %cst_22 : f32 to vector<1x128xf32>
    %121 = arith.addf %119, %120 : vector<1x128xf32>
    %122 = arith.divf %110, %121 : vector<1x128xf32>
    %123 = arith.subf %101, %122 : vector<1x128xf32>
    %124 = tpu.iota {dimensions = array<i32: 0>} : vector<1x128xi32>
    %c128_i32_23 = arith.constant 128 : i32
    %125 = vector.broadcast %c128_i32_23 : i32 to vector<1x128xi32>
    %126 = arith.muli %124, %125 : vector<1x128xi32>
    %127 = vector.broadcast %2 : i32 to vector<1x128xi32>
    %128 = arith.addi %127, %126 : vector<1x128xi32>
    %129 = tpu.iota {dimensions = array<i32: 1>} : vector<1x128xi32>
    %130 = arith.addi %128, %129 : vector<1x128xi32>
    %cst_24 = arith.constant 2.500000e-01 : f32
    %131 = vector.broadcast %cst_24 : f32 to vector<1x128xf32>
    %132 = arith.mulf %131, %79 : vector<1x128xf32>
    %cst_25 = arith.constant 1.000000e+00 : f32
    %133 = vector.broadcast %cst_25 : f32 to vector<1x128xf32>
    %134 = arith.subf %133, %123 : vector<1x128xf32>
    %cst_26 = arith.constant 1.000000e+00 : f32
    %135 = vector.broadcast %cst_26 : f32 to vector<1x128xf32>
    %136 = arith.mulf %135, %134 : vector<1x128xf32>
    %137 = arith.addf %132, %136 : vector<1x128xf32>
    %c8_i32_27 = arith.constant 8 : i32
    %138 = vector.broadcast %c8_i32_27 : i32 to vector<1x128xi32>
    %139 = arith.cmpi slt, %130, %138 : vector<1x128xi32>
    %cst_28 = arith.constant 0.000000e+00 : f32
    %140 = vector.broadcast %cst_28 : f32 to vector<1x128xf32>
    %141 = arith.select %139, %137, %140 : vector<1x128xi1>, vector<1x128xf32>
    %142 = vector.shape_cast %141 : vector<1x128xf32> to vector<1x1x128xf32>
    %cst_29 = arith.constant dense<0.000000e+00> : vector<1xf32>
    %143 = vector.multi_reduction <add>, %142, %cst_29 [1, 2] : vector<1x1x128xf32> to vector<1xf32>
    %144 = vector.shape_cast %143 : vector<1xf32> to vector<1x1x1xf32>
    %145 = vector.extract %144[0, 0, 0] : f32 from vector<1x1x1xf32>
    %c0_30 = arith.constant 0 : index
    %c0_31 = arith.constant 0 : index
    %146 = memref.load %arg6[%c0_30, %c0_31] : memref<1x1xf32, #tpu.memory_space<smem>>
    %cst_32 = arith.constant 2.500000e-01 : f32
    %147 = arith.mulf %cst_32, %50 : f32
    %148 = arith.addf %147, %145 : f32
    %cst_33 = arith.constant 1.250000e-01 : f32
    %149 = arith.mulf %148, %cst_33 : f32
    %150 = arith.addf %146, %149 : f32
    %c0_34 = arith.constant 0 : index
    %c0_35 = arith.constant 0 : index
    %151 = memref.load %arg6[%c0_34, %c0_35] : memref<1x1xf32, #tpu.memory_space<smem>>
    memref.store %150, %arg6[%c0_34, %c0_35] : memref<1x1xf32, #tpu.memory_space<smem>>
    return
  }
  func.func @transform_0(%arg0: i32, %arg1: i32) -> (i32, i32) {
    %c1_i32 = arith.constant 1 : i32
    %0 = arith.muli %arg0, %c1_i32 : i32
    %1 = arith.addi %0, %arg1 : i32
    %c0_i32 = arith.constant 0 : i32
    %2 = arith.minsi %1, %c0_i32 : i32
    %c0_i32_0 = arith.constant 0 : i32
    %c0_i32_1 = arith.constant 0 : i32
    return %2, %c0_i32_0 : i32, i32
  }
  func.func @transform_1(%arg0: i32, %arg1: i32) -> (i32, i32) {
    %c1_i32 = arith.constant 1 : i32
    %0 = arith.muli %arg0, %c1_i32 : i32
    %1 = arith.addi %0, %arg1 : i32
    %c0_i32 = arith.constant 0 : i32
    %c0_i32_0 = arith.constant 0 : i32
    return %1, %c0_i32 : i32, i32
  }
  func.func @transform_2(%arg0: i32, %arg1: i32) -> (i32, i32, i32) {
    %c1_i32 = arith.constant 1 : i32
    %0 = arith.muli %arg0, %c1_i32 : i32
    %1 = arith.addi %0, %arg1 : i32
    %c0_i32 = arith.constant 0 : i32
    %c0_i32_0 = arith.constant 0 : i32
    %c0_i32_1 = arith.constant 0 : i32
    return %1, %c0_i32, %c0_i32_0 : i32, i32, i32
  }
  func.func @transform_3(%arg0: i32, %arg1: i32) -> (i32, i32, i32) {
    %c1_i32 = arith.constant 1 : i32
    %0 = arith.muli %arg0, %c1_i32 : i32
    %1 = arith.addi %0, %arg1 : i32
    %c0_i32 = arith.constant 0 : i32
    %c0_i32_0 = arith.constant 0 : i32
    %c0_i32_1 = arith.constant 0 : i32
    return %1, %c0_i32, %c0_i32_0 : i32, i32, i32
  }
  func.func @transform_4(%arg0: i32, %arg1: i32) -> (i32, i32) {
    %c0_i32 = arith.constant 0 : i32
    %c0_i32_0 = arith.constant 0 : i32
    return %arg0, %c0_i32 : i32, i32
  }
}

</mosaic_0001>

<bundles_post_ra>
// kernel: tpu_custom_call.1
= control target key start
LH: loop header
LB: loop body
LE: loop exit
PB: predicated region body
PF: predicated region fallthrough
CT: control target
= control target key end

     0   :  { %vm156_vm0 = vcmask 261120   ;;  %s909_s0 = inlined_call_operand.vmem [shape: f32[8,32], index: 0, kind: input, shape index: {}]   ;;  %s910_s1 = inlined_call_operand.vmem [shape: s32[128,1], index: 1, kind: input, shape index: {}]   ;;  %s911_s2 = inlined_call_operand.vmem [shape: f32[1,4,128], index: 2, kind: input, shape index: {}]   ;;  %s912_s3 = inlined_call_operand.vmem [shape: f32[1,4,128], index: 3, kind: input, shape index: {}]   ;;  %s913_s4 = inlined_call_operand.hbm [shape: f32[1,1], index: 4, kind: output, shape index: {}]  }
   0x1   :  { %v124_v0 = vld [vmem:[%s909_s0] sm:$0xff] }
   0x2   :  { %9 = vsyncpa [#allocation3], 0  ;;  %v157_v1 = vsel %vm156_vm0, %v124_v0, -inf  ;;  %v858_v2 = vmov 0   ;;  %v140_v3 = vld [vmem:[%s910_s1] sm:$0xff]  ;;  %v333_v7 = vlaneseq  ;;  %vm642_vm3 = vcmask 7168  }
   0x3   :  { %837 = vset.pattern.permute.xlu0 %v858_v2  ;;  %v686_v14 = vld [vmem:[%s911_s2] sm:$0xf]  ;;  %vm775_vm4 = vcmask 1040384   ;;  %s859_s24 = smov [#allocation2]  }
   0x4   :  { %158 = vmax.xlane.f32.xlu0 %v157_v1  ;;  %v893_v8 = vand.u32 127, %v333_v7  ;;  %v687_v15 = vld [vmem:[%s912_s3] sm:$0xf]  ;;  %v701_v19 = vrot.slane %v686_v14, 6  ;;  %v732_v34 = vrot.slane %v686_v14, 2 }
   0x5   :  { %v716_v16 = vmin.f32 %v686_v14, %v687_v15  ;;  %v717_v17 = vmax.f32 %v686_v14, %v687_v15  ;;  %v709_v20 = vrot.slane %v687_v15, 6  ;;  %v736_v42 = vrot.slane %v687_v15, 2 }
   0x6   :  { %v703_v23 = vsub.f32 %v686_v14, %v701_v19  ;;  %v734_v38 = vadd.f32 %v732_v34, %v686_v14  ;;  %v688_v48 = vsub.f32 %v686_v14, %v687_v15 }
   0x7   :  { %v745_v18 = vrot.slane %v716_v16, 6  ;;  %v719_v21 = vrot.slane %v717_v17, 6  ;;  %v711_v24 = vsub.f32 %v687_v15, %v709_v20 }
   0x8   :  { %v705_v27 = vrot.slane %v703_v23, 1  ;;  %v735_v41 = vsub.f32 %v734_v38, %v687_v15  ;;  %v689_v51 = vand.u32 2147483647, %v688_v48 }
   0x9   :  { %v747_v22 = vsub.f32 %v717_v17, %v745_v18  ;;  %v721_v25 = vsub.f32 %v716_v16, %v719_v21  ;;  %v713_v28 = vrot.slane %v711_v24, 1 }
   0xa   :  { %v707_v31 = vmul.f32 %v705_v27, %v703_v23  ;;  %v738_v46 = vsub.f32 %v735_v41, %v736_v42  ;;  %v691_v57 = vrot.slane %v689_v51, 1  ;;  %v694_v63 = vrot.slane %v689_v51, 2 }
   0xb   :  { %v748_v26 = vmul.f32 %v747_v22, %v747_v22  ;;  %v722_v29 = vmax.f32 %v721_v25, 0.0  ;;  %v715_v32 = vmul.f32 %v713_v28, %v711_v24 }
   0xc   :  { %v739_v47 = vmul.f32 %v738_v46, %v738_v46  ;;  %v693_v62 = vadd.f32 %v691_v57, %v689_v51 }
   0xd   :  { %v750_v30 = vrot.slane %v748_v26, 1  ;;  %v724_v33 = vrot.slane %v722_v29, 1  ;;  %v727_v37 = vadd.f32 %v715_v32, %v707_v31 }
   0xe   :  { %v741_v49 = vrot.slane %v739_v47, 1  ;;  %v696_v2 = vadd.f32 %v694_v63, %v693_v62 }
   0xf   :  { %v752_v35 = vadd.f32 %v750_v30, %v748_v26  ;;  %v726_v36 = vmul.f32 %v724_v33, %v722_v29 }
  0x10   :  { %v743_v52 = vadd.f32 %v741_v49, %v739_v47 }
  0x11   :  { %v753_v39 = vadd.f32 1e-06, %v752_v35  ;;  %v728_v40 = vsub.f32 %v727_v37, %v726_v36 }
  0x13   :  { %v755_v43 = vrot.slane %v753_v39, 2  ;;  %v729_v45 = vadd.f32 1e-06, %v728_v40 }
  0x1a   :  { %336 = vperm.xlu0 %837, %v140_v3   ;;  %v697_v3 = vrot.slane %v689_v51, 3 }
  0x8d   :  { %v159_v4 = vpop.xlane.xlu0 %158 }
  0x8e   :  { %v205_v5 = vsub.f32 %v124_v0, %v159_v4 }
  0x90   :  { %v221_v6 = vmul.f32 1.442695, %v205_v5 }
  0x92   :  { %838 = vpow2.f32 %v221_v6  ;;  %v699_v6 = vadd.f32 %v697_v3, %v696_v2 }
  0x95   :  { %v337_v9 = vpop.permute.xlu0 %336 }
  0x96   :  { %vm383_vm1 = vcmp.eq.s32.totalorder %v893_v8, %v337_v9 }
  0x97   :  { %v399_v12 = vsel %vm383_vm1, %v205_v5, 0.0  ;;  %v561_v5 = vshrl.u32 %v333_v7, 7 }
  0x98   :  { %v415_v13 = vsel %vm156_vm0, %v399_v12, 0.0 }
  0x9f   :  { %v839_v10 = vpop.eup %838 }
  0xa0   :  { %v253_v11 = vsel %vm156_vm0, %v839_v10, 0.0  ;;  %v763_v10 = vmul.u32 128, %v561_v5 }
  0xa1   :  { %254 = vadd.xlane.f32.xlu1 %v253_v11  ;;  %v767_v11 = vmul.f32 0.25, %v699_v6 }
  0xa5   :  { %416 = vadd.xlane.f32.xlu1 %v415_v13  ;;  %v766_v13 = vadd.s32 %v763_v10, %v893_v8 }
  0xa7   :  { %vm773_vm2 = vcmp.lt.s32.totalorder %v766_v13, 8 }
 0x12a   :  { %v255_v44 = vpop.xlane.xlu1 %254 }
 0x12b   :  { %840 = vlog2.f32 %v255_v44 }
 0x12c   :  { %842 = vrcp.f32 %v755_v43 }
 0x12d   :  { %844 = vrcp.f32 %v729_v45 }
 0x12e   :  { %v417_v55 = vpop.xlane.xlu1 %416 }
 0x138   :  { %v841_v50 = vpop.eup %840 }
 0x139   :  { %v843_v53 = vpop.eup %842  ;;  %v302_v54 = vmul.f32 0.6931472, %v841_v50 }
 0x13a   :  { %v758_v58 = vmul.f32 %v843_v53, %v743_v52  ;;  %v845_v59 = vpop.eup %844 }
 0x13b   :  { %v463_v56 = vsub.f32 %v302_v54, %v417_v55  ;;  %v731_v0 = vmul.f32 %v845_v59, %v726_v36 }
 0x13c   :  { %v760_v1 = vrot.slane %v758_v58, 6 }
 0x13d   :  { %v479_v60 = vsub.f32 0.0, %v463_v56 }
 0x13e   :  { %v762_v4 = vsub.f32 %v731_v0, %v760_v1 }
 0x13f   :  { %v495_v61 = vmul.f32 1.442695, %v479_v60 }
 0x140   :  { %v768_v9 = vsub.f32 1.0, %v762_v4 }
 0x141   :  { %846 = vpow2.f32 %v495_v61 }
 0x142   :  { %v770_v12 = vrot.slane %v768_v9, 2 }
 0x144   :  { %v772_v16 = vadd.f32 %v770_v12, %v767_v11 }
 0x146   :  { %v774_v19 = vsel %vm773_vm2, %v772_v16, 0.0 }
 0x147   :  { %v776_v21 = vsel %vm775_vm4, %v774_v19, 0.0 }
 0x14e   :  { %v847_v14 = vpop.eup %846 }
 0x14f   :  { %v527_v15 = vsub.f32 1.0, %v847_v14 }
 0x151   :  { %v543_v17 = vmul.f32 %v527_v15, %v527_v15 }
 0x153   :  { %v610_v18 = vmul.f32 %v543_v17, %v463_v56 }
 0x155   :  { %v643_v20 = vsel %vm642_vm3, %v610_v18, 0.0 }
 0x156   :  { %674 = vadd.xlane.f32.xlu1 %v643_v20 }
 0x15a   :  { %777 = vadd.xlane.f32.xlu1 %v776_v21 }
 0x1df   :  { %v675_v7 = vpop.xlane.xlu1 %674 }
 0x1e0   :  { %v676_v22 = vrot.slane %v675_v7, 4 }
 0x1e2   :  { %v677_v23 = vadd.f32 %v676_v22, %v675_v7 }
 0x1e3   :  { %v778_v24 = vpop.xlane.xlu1 %777 }
 0x1e4   :  { %v678_v25 = vrot.slane %v677_v23, 2  ;;  %v779_v26 = vrot.slane %v778_v24, 4 }
 0x1e6   :  { %v780_v8 = vadd.f32 %v779_v26, %v778_v24  ;;  %v679_v27 = vadd.f32 %v678_v25, %v677_v23 }
 0x1e8   :  { %v781_v28 = vrot.slane %v780_v8, 2  ;;  %v680_v29 = vrot.slane %v679_v27, 1 }
 0x1ea   :  { %v782_v30 = vadd.f32 %v781_v28, %v780_v8  ;;  %v681_v31 = vadd.f32 %v680_v29, %v679_v27 }
 0x1ec   :  { %830 = vpush %v681_v31  ;;  %v783_v32 = vrot.slane %v782_v30, 1 }
 0x1ee   :  { %v784_v33 = vadd.f32 %v783_v32, %v782_v30 }
 0x1f0   :  { %832 = vpush %v784_v33 }
 0x21d   :  { %s831_s2 = spop %830 }
 0x21e   :  { %s787_s3 = smul.f32 0.25, %s831_s2 }
 0x221   :  { %s833_s21 = spop %832 }
 0x222   :  { %s788_s22 = sadd.f32 %s833_s21, %s787_s3 }
 0x224   :  { %s789_s23 = smul.f32 0.125, %s788_s22 }
 0x226   :  { %792 = sst [smem:[#allocation2]] %s789_s23 }
 0x227   :  { %800 = dma.smem_to_hbm %s859_s24, 16, %s913_s4, [#allocation3]  }
 0x228   :  { %856 = dma.done.wait [#allocation3], 16  }
 0x229   :  { %857 = vsyncadd [#allocation3], 4294967280 }
 0x22a   :  { %804 = sfence }
 0x22b   :  { %805 = vsyncpa [#allocation3], 1 }

</bundles_post_ra>
